<compile_context>
chip_gen: v6e
topology: v6e:2x2x1
jax: 0.10.0
libtpu: 0.0.40
codegen_flags: <defaults>
</compile_context>

<pallas_src>
import math
import functools

import jax
import jax.numpy as jnp
from jax import lax
from jax.experimental import pallas as pl
from jax.experimental.pallas import tpu as pltpu


def _attention_kernel(x_ref, mask_ref,
                      wq_ref, bq_ref, wk_ref, bk_ref, wv_ref, bv_ref,
                      wo_ref, bo_ref, gamma_ref, beta_ref,
                      out_ref,
                      k_scr, v_scr,
                      *, num_heads: int, head_dim: int, tq: int, eps: float):
    # x_ref:    (1, S, H)    full sequence of the current batch element (f32)
    # mask_ref: (1, 1, 1, S) additive attention mask (f32)
    # weights:  (H, H) bf16 (pre-transposed: y = x @ W + b), biases/ln params (1, H) f32
    # out_ref:  (1, tq, H)
    # k_scr/v_scr: (nh, S, d) bf16 scratch, cached per batch element
    qi = pl.program_id(1)
    S = k_scr.shape[1]
    H = num_heads * head_dim
    inv_sqrt_d = 1.0 / math.sqrt(head_dim)

    # ---- once per batch element: project K and V for the full sequence ----
    @pl.when(qi == 0)
    def _():
        x_full = x_ref[0].astype(jnp.bfloat16)                                 # (S, H)
        k = jnp.dot(x_full, wk_ref[...], preferred_element_type=jnp.float32) + bk_ref[...]
        v = jnp.dot(x_full, wv_ref[...], preferred_element_type=jnp.float32) + bv_ref[...]
        # (S, H) -> (nh, S, d), stored once in bf16 for the score/context matmuls.
        k_scr[...] = jnp.transpose(
            k.reshape(S, num_heads, head_dim), (1, 0, 2)).astype(jnp.bfloat16)
        v_scr[...] = jnp.transpose(
            v.reshape(S, num_heads, head_dim), (1, 0, 2)).astype(jnp.bfloat16)

    # ---- per query tile ----
    row0 = pl.multiple_of(qi * tq, tq)
    x_q = x_ref[0, pl.ds(row0, tq), :]                                         # (tq, H) f32
    x_qb = x_q.astype(jnp.bfloat16)

    # Q projection; fold the 1/sqrt(d) scale into the (tq, H) tensor (cheaper than
    # scaling the (nh, tq, S) scores).
    q = (jnp.dot(x_qb, wq_ref[...], preferred_element_type=jnp.float32)
         + bq_ref[...]) * inv_sqrt_d                                           # (tq, H)
    q_h = jnp.transpose(
        q.reshape(tq, num_heads, head_dim), (1, 0, 2)).astype(jnp.bfloat16)    # (nh, tq, d)

    # Head-batched attention scores for all heads in one contraction.
    scores = jnp.einsum('hqd,hkd->hqk', q_h, k_scr[...],
                        preferred_element_type=jnp.float32)                    # (nh, tq, S)
    mask = mask_ref[0, 0].astype(jnp.float32)                                  # (1, S)
    scores = scores + mask[None]                                               # bcast heads & rows

    # Numerically-stable softmax; divide moved to the EUP via approx reciprocal.
    scores = scores - jnp.max(scores, axis=-1, keepdims=True)
    probs = jnp.exp(scores)
    denom = jnp.sum(probs, axis=-1, keepdims=True)
    probs = probs * pl.reciprocal(denom, approx=True)
    # (attention-prob dropout is identity in eval mode)

    ctx_h = jnp.einsum('hqk,hkd->hqd', probs.astype(jnp.bfloat16), v_scr[...],
                       preferred_element_type=jnp.float32)                     # (nh, tq, d)
    ctx = jnp.transpose(ctx_h, (1, 0, 2)).reshape(tq, H)                       # (tq, H)

    # RobertaSelfOutput: dense -> (dropout) -> residual -> LayerNorm (all f32 math).
    attn_out = jnp.dot(ctx.astype(jnp.bfloat16), wo_ref[...],
                       preferred_element_type=jnp.float32) + bo_ref[...]
    y = attn_out + x_q

    mean = jnp.mean(y, axis=-1, keepdims=True)
    var = jnp.mean(jnp.square(y - mean), axis=-1, keepdims=True)
    y_norm = (y - mean) * lax.rsqrt(var + eps)
    out = y_norm * gamma_ref[...] + beta_ref[...]

    out_ref[0] = out.astype(out_ref.dtype)


def _pick_query_tile(S: int) -> int:
    # Query tile: 128/256-aligned for MXU fill when possible, else the full sequence
    # (keeps the (8,128) BlockSpec rule satisfied via the "full dim" escape hatch).
    for cand in (256, 128):
        if S % cand == 0:
            return cand
    return S


def roberta_attention(hidden_states, attention_mask, params,
                      *, num_heads: int, layer_norm_eps: float = 1e-12):
    """hidden_states: (B, S, H) float32; attention_mask: (B, 1, 1, S) additive mask."""
    B, S, H = hidden_states.shape
    assert H % num_heads == 0
    head_dim = H // num_heads
    tq = _pick_query_tile(S)
    nq = S // tq

    kernel = functools.partial(
        _attention_kernel,
        num_heads=num_heads,
        head_dim=head_dim,
        tq=tq,
        eps=layer_norm_eps,
    )

    weight_spec = pl.BlockSpec((H, H), lambda b, qi: (0, 0))   # constant across grid
    vec_spec = pl.BlockSpec((1, H), lambda b, qi: (0, 0))

    grid_spec = pltpu.PrefetchScalarGridSpec(
        num_scalar_prefetch=0,
        grid=(B, nq),
        in_specs=[
            pl.BlockSpec((1, S, H), lambda b, qi: (b, 0, 0)),        # hidden_states (full seq)
            pl.BlockSpec((1, 1, 1, S), lambda b, qi: (b, 0, 0, 0)),  # additive attention mask
            weight_spec, vec_spec,   # Wq (bf16), bq
            weight_spec, vec_spec,   # Wk (bf16), bk
            weight_spec, vec_spec,   # Wv (bf16), bv
            weight_spec, vec_spec,   # Wo (bf16), bo
            vec_spec, vec_spec,      # LayerNorm gamma, beta
        ],
        out_specs=pl.BlockSpec((1, tq, H), lambda b, qi: (b, qi, 0)),
        scratch_shapes=[
            pltpu.VMEM((num_heads, S, head_dim), jnp.bfloat16),   # cached K (head-major)
            pltpu.VMEM((num_heads, S, head_dim), jnp.bfloat16),   # cached V (head-major)
        ],
    )

    # Advisory cost estimate for XLA's scheduler.
    flops = 8 * B * S * H * H + 4 * B * num_heads * S * S * head_dim
    transcendentals = B * num_heads * S * S
    bytes_accessed = 2 * B * S * H * 4 + 4 * H * H * 2 + 8 * H * 4 + B * S * 4

    return pl.pallas_call(
        kernel,
        out_shape=jax.ShapeDtypeStruct((B, S, H), hidden_states.dtype),
        grid_spec=grid_spec,
        compiler_params=pltpu.CompilerParams(
            # batch axis is parallel (megacore); the query-tile axis carries the K/V
            # scratch-cache dependency, so it stays "arbitrary" (sequential).
            dimension_semantics=("parallel", "arbitrary"),
            vmem_limit_bytes=48 * 1024 * 1024,
        ),
        cost_estimate=pl.CostEstimate(
            flops=flops,
            transcendentals=transcendentals,
            bytes_accessed=bytes_accessed,
        ),
    )(
        hidden_states, attention_mask,
        params["wq"].astype(jnp.bfloat16), params["bq"],
        params["wk"].astype(jnp.bfloat16), params["bk"],
        params["wv"].astype(jnp.bfloat16), params["bv"],
        params["wo"].astype(jnp.bfloat16), params["bo"],
        params["ln_gamma"], params["ln_beta"],
    )


def init_params(key, hidden_size):
    """Deterministic synthetic parameters (shapes match RobertaAttention.__init__)."""
    keys = jax.random.split(key, 8)
    scale = 0.02

    def lin(kw, kb):
        # torch nn.Linear weight is (out, in); we store its transpose (in, out).
        w = scale * jax.random.normal(kw, (hidden_size, hidden_size), jnp.float32)
        b = scale * jax.random.normal(kb, (1, hidden_size), jnp.float32)
        return w, b

    wq, bq = lin(keys[0], keys[1])
    wk, bk = lin(keys[2], keys[3])
    wv, bv = lin(keys[4], keys[5])
    wo, bo = lin(keys[6], keys[7])
    return {
        "wq": wq, "bq": bq,
        "wk": wk, "bk": bk,
        "wv": wv, "bv": bv,
        "wo": wo, "bo": bo,
        "ln_gamma": jnp.ones((1, hidden_size), jnp.float32),
        "ln_beta": jnp.zeros((1, hidden_size), jnp.float32),
    }


def _reference(hidden_states, attention_mask, params, num_heads, eps):
    """Pure-JAX f32 reference matching RobertaAttention (eval mode)."""
    B, S, H = hidden_states.shape
    d = H // num_heads

    def split(t):
        return t.reshape(B, S, num_heads, d).transpose(0, 2, 1, 3)

    q = split(hidden_states @ params["wq"] + params["bq"])
    k = split(hidden_states @ params["wk"] + params["bk"])
    v = split(hidden_states @ params["wv"] + params["bv"])

    scores = (q @ jnp.swapaxes(k, -1, -2)) / math.sqrt(d) + attention_mask
    probs = jax.nn.softmax(scores, axis=-1)
    ctx = (probs @ v).transpose(0, 2, 1, 3).reshape(B, S, H)

    attn_out = ctx @ params["wo"] + params["bo"]
    y = attn_out + hidden_states
    mean = y.mean(-1, keepdims=True)
    var = ((y - mean) ** 2).mean(-1, keepdims=True)
    return (y - mean) / jnp.sqrt(var + eps) * params["ln_gamma"] + params["ln_beta"]


if __name__ == "__main__":
    # Small config: batch=2, seq=8, hidden=32, heads=4 (head_dim=8).
    B, S, H, NH = 2, 8, 32, 4

    key = jax.random.PRNGKey(0)
    k_x, k_m, k_p = jax.random.split(key, 3)

    hidden_states = jax.random.normal(k_x, (B, S, H), jnp.float32)

    # Additive attention mask: 0 for attended positions, -10000 for masked ones.
    keep = (jax.random.uniform(k_m, (B, S)) > 0.2).astype(jnp.float32)
    keep = keep.at[:, 0].set(1.0)  # make sure at least one position is attendable
    attention_mask = ((1.0 - keep) * -10000.0).reshape(B, 1, 1, S)

    params = init_params(k_p, H)

    out = roberta_attention(hidden_states, attention_mask, params,
                            num_heads=NH, layer_norm_eps=1e-12)
    jax.block_until_ready(out)

    assert out.shape == (B, S, H)

    ref = _reference(hidden_states, attention_mask, params, NH, 1e-12)
    max_err = float(jnp.max(jnp.abs(out.astype(jnp.float32) - ref)))
    assert max_err < 5e-2, f"max abs err vs reference: {max_err}"

    print("KERNEL_OK")
</pallas_src>

<mosaic_0001>
module attributes {stable_mosaic.version = 11 : i64} {
  func.func @_attention_kernel(%arg0: i32, %arg1: i32, %arg2: memref<1x8x32xf32, #tpu.memory_space<vmem>>, %arg3: memref<1x1x1x8xf32, #tpu.memory_space<vmem>>, %arg4: memref<32x32xbf16, #tpu.memory_space<vmem>>, %arg5: memref<1x32xf32, #tpu.memory_space<vmem>>, %arg6: memref<32x32xbf16, #tpu.memory_space<vmem>>, %arg7: memref<1x32xf32, #tpu.memory_space<vmem>>, %arg8: memref<32x32xbf16, #tpu.memory_space<vmem>>, %arg9: memref<1x32xf32, #tpu.memory_space<vmem>>, %arg10: memref<32x32xbf16, #tpu.memory_space<vmem>>, %arg11: memref<1x32xf32, #tpu.memory_space<vmem>>, %arg12: memref<1x32xf32, #tpu.memory_space<vmem>>, %arg13: memref<1x32xf32, #tpu.memory_space<vmem>>, %arg14: memref<1x8x32xf32, #tpu.memory_space<vmem>>, %arg15: memref<4x8x8xbf16, #tpu.memory_space<vmem>>, %arg16: memref<4x8x8xbf16, #tpu.memory_space<vmem>>) attributes {dimension_semantics = [#tpu.dimension_semantics<parallel>, #tpu.dimension_semantics<arbitrary>], iteration_bounds = array<i64: 2, 1>, scalar_prefetch = 0 : i64, scratch_operands = 2 : i64, tpu.core_type = #tpu.core_type<tc>, window_params = [{transform_indices = @transform_0, window_bounds = array<i64: 1, 8, 32>}, {transform_indices = @transform_1, window_bounds = array<i64: 1, 1, 1, 8>}, {pipeline_mode = #tpu.pipeline_mode<synchronous>, transform_indices = @transform_2, window_bounds = array<i64: 32, 32>}, {pipeline_mode = #tpu.pipeline_mode<synchronous>, transform_indices = @transform_3, window_bounds = array<i64: 1, 32>}, {pipeline_mode = #tpu.pipeline_mode<synchronous>, transform_indices = @transform_4, window_bounds = array<i64: 32, 32>}, {pipeline_mode = #tpu.pipeline_mode<synchronous>, transform_indices = @transform_5, window_bounds = array<i64: 1, 32>}, {pipeline_mode = #tpu.pipeline_mode<synchronous>, transform_indices = @transform_6, window_bounds = array<i64: 32, 32>}, {pipeline_mode = #tpu.pipeline_mode<synchronous>, transform_indices = @transform_7, window_bounds = array<i64: 1, 32>}, {pipeline_mode = #tpu.pipeline_mode<synchronous>, transform_indices = @transform_8, window_bounds = array<i64: 32, 32>}, {pipeline_mode = #tpu.pipeline_mode<synchronous>, transform_indices = @transform_9, window_bounds = array<i64: 1, 32>}, {pipeline_mode = #tpu.pipeline_mode<synchronous>, transform_indices = @transform_10, window_bounds = array<i64: 1, 32>}, {pipeline_mode = #tpu.pipeline_mode<synchronous>, transform_indices = @transform_11, window_bounds = array<i64: 1, 32>}, {transform_indices = @transform_12, window_bounds = array<i64: 1, 8, 32>}]} {
    %c0_i32 = arith.constant 0 : i32
    %0 = arith.cmpi eq, %arg1, %c0_i32 : i32
    %1 = arith.extui %0 : i1 to i32
    %c0_i32_0 = arith.constant 0 : i32
    %2 = arith.cmpi ne, %1, %c0_i32_0 : i32
    scf.if %2 {
      %c0_38 = arith.constant 0 : index
      %c0_39 = arith.constant 0 : index
      %c0_40 = arith.constant 0 : index
      %75 = vector.load %arg2[%c0_38, %c0_39, %c0_40] : memref<1x8x32xf32, #tpu.memory_space<vmem>>, vector<1x8x32xf32>
      %76 = vector.shape_cast %75 : vector<1x8x32xf32> to vector<8x32xf32>
      %77 = arith.truncf %76 : vector<8x32xf32> to vector<8x32xbf16>
      %c0_41 = arith.constant 0 : index
      %c0_42 = arith.constant 0 : index
      %78 = vector.load %arg6[%c0_41, %c0_42] : memref<32x32xbf16, #tpu.memory_space<vmem>>, vector<32x32xbf16>
      %cst_43 = arith.constant dense<0.000000e+00> : vector<8x32xf32>
      %79 = tpu.matmul %77, %78, %cst_43 {dimension_numbers = #tpu.dot_dimension_numbers<[1], [0], [0], [1], [0, 0, 1, 1], [], []>} : vector<8x32xbf16>, vector<32x32xbf16>, vector<8x32xf32> -> vector<8x32xf32>
      %c0_44 = arith.constant 0 : index
      %c0_45 = arith.constant 0 : index
      %80 = vector.load %arg7[%c0_44, %c0_45] : memref<1x32xf32, #tpu.memory_space<vmem>>, vector<1x32xf32>
      %81 = vector.broadcast %80 : vector<1x32xf32> to vector<8x32xf32>
      %82 = arith.addf %79, %81 : vector<8x32xf32>
      %c0_46 = arith.constant 0 : index
      %c0_47 = arith.constant 0 : index
      %83 = vector.load %arg8[%c0_46, %c0_47] : memref<32x32xbf16, #tpu.memory_space<vmem>>, vector<32x32xbf16>
      %cst_48 = arith.constant dense<0.000000e+00> : vector<8x32xf32>
      %84 = tpu.matmul %77, %83, %cst_48 {dimension_numbers = #tpu.dot_dimension_numbers<[1], [0], [0], [1], [0, 0, 1, 1], [], []>} : vector<8x32xbf16>, vector<32x32xbf16>, vector<8x32xf32> -> vector<8x32xf32>
      %c0_49 = arith.constant 0 : index
      %c0_50 = arith.constant 0 : index
      %85 = vector.load %arg9[%c0_49, %c0_50] : memref<1x32xf32, #tpu.memory_space<vmem>>, vector<1x32xf32>
      %86 = vector.broadcast %85 : vector<1x32xf32> to vector<8x32xf32>
      %87 = arith.addf %84, %86 : vector<8x32xf32>
      %88 = vector.shape_cast %82 : vector<8x32xf32> to vector<8x4x8xf32>
      %89 = tpu.transpose %88, [1, 0, 2] : vector<8x4x8xf32> -> vector<4x8x8xf32>
      %90 = arith.truncf %89 : vector<4x8x8xf32> to vector<4x8x8xbf16>
      %c0_51 = arith.constant 0 : index
      %c0_52 = arith.constant 0 : index
      %c0_53 = arith.constant 0 : index
      %91 = vector.load %arg15[%c0_51, %c0_52, %c0_53] : memref<4x8x8xbf16, #tpu.memory_space<vmem>>, vector<4x8x8xbf16>
      tpu.vector_store %arg15[%c0_51, %c0_52, %c0_53], %90 {strides = array<i32>} : memref<4x8x8xbf16, #tpu.memory_space<vmem>>, vector<4x8x8xbf16>,
      %92 = vector.shape_cast %87 : vector<8x32xf32> to vector<8x4x8xf32>
      %93 = tpu.transpose %92, [1, 0, 2] : vector<8x4x8xf32> -> vector<4x8x8xf32>
      %94 = arith.truncf %93 : vector<4x8x8xf32> to vector<4x8x8xbf16>
      %c0_54 = arith.constant 0 : index
      %c0_55 = arith.constant 0 : index
      %c0_56 = arith.constant 0 : index
      %95 = vector.load %arg16[%c0_54, %c0_55, %c0_56] : memref<4x8x8xbf16, #tpu.memory_space<vmem>>, vector<4x8x8xbf16>
      tpu.vector_store %arg16[%c0_54, %c0_55, %c0_56], %94 {strides = array<i32>} : memref<4x8x8xbf16, #tpu.memory_space<vmem>>, vector<4x8x8xbf16>,
    } else {
    }
    %c8_i32 = arith.constant 8 : i32
    %3 = arith.muli %arg1, %c8_i32 : i32
    %4 = tpu.assume_multiple %3, 8 : i32
    %c0 = arith.constant 0 : index
    %5 = arith.index_cast %4 : i32 to index
    %c0_1 = arith.constant 0 : index
    %6 = vector.load %arg2[%c0, %5, %c0_1] : memref<1x8x32xf32, #tpu.memory_space<vmem>>, vector<1x8x32xf32>
    %7 = vector.shape_cast %6 : vector<1x8x32xf32> to vector<8x32xf32>
    %8 = arith.truncf %7 : vector<8x32xf32> to vector<8x32xbf16>
    %c0_2 = arith.constant 0 : index
    %c0_3 = arith.constant 0 : index
    %9 = vector.load %arg4[%c0_2, %c0_3] : memref<32x32xbf16, #tpu.memory_space<vmem>>, vector<32x32xbf16>
    %cst = arith.constant dense<0.000000e+00> : vector<8x32xf32>
    %10 = tpu.matmul %8, %9, %cst {dimension_numbers = #tpu.dot_dimension_numbers<[1], [0], [0], [1], [0, 0, 1, 1], [], []>} : vector<8x32xbf16>, vector<32x32xbf16>, vector<8x32xf32> -> vector<8x32xf32>
    %c0_4 = arith.constant 0 : index
    %c0_5 = arith.constant 0 : index
    %11 = vector.load %arg5[%c0_4, %c0_5] : memref<1x32xf32, #tpu.memory_space<vmem>>, vector<1x32xf32>
    %12 = vector.broadcast %11 : vector<1x32xf32> to vector<8x32xf32>
    %13 = arith.addf %10, %12 : vector<8x32xf32>
    %cst_6 = arith.constant 0.353553385 : f32
    %14 = vector.broadcast %cst_6 : f32 to vector<8x32xf32>
    %15 = arith.mulf %13, %14 : vector<8x32xf32>
    %16 = vector.shape_cast %15 : vector<8x32xf32> to vector<8x4x8xf32>
    %17 = tpu.transpose %16, [1, 0, 2] : vector<8x4x8xf32> -> vector<4x8x8xf32>
    %18 = arith.truncf %17 : vector<4x8x8xf32> to vector<4x8x8xbf16>
    %c0_7 = arith.constant 0 : index
    %c0_8 = arith.constant 0 : index
    %c0_9 = arith.constant 0 : index
    %19 = vector.load %arg15[%c0_7, %c0_8, %c0_9] : memref<4x8x8xbf16, #tpu.memory_space<vmem>>, vector<4x8x8xbf16>
    "tpu.trace_start"() <{level = 10 : i32, message = "hqd,hkd->hqk"}> : () -> ()
    %cst_10 = arith.constant dense<0.000000e+00> : vector<4x8x8xf32>
    %20 = tpu.matmul %18, %19, %cst_10 {dimension_numbers = #tpu.dot_dimension_numbers<[2], [2], [1], [1], [0, 0, 0, 1, 1, 1], [0], [0]>} : vector<4x8x8xbf16>, vector<4x8x8xbf16>, vector<4x8x8xf32> -> vector<4x8x8xf32>
    "tpu.trace_stop"() : () -> ()
    %c0_11 = arith.constant 0 : index
    %c0_12 = arith.constant 0 : index
    %c0_13 = arith.constant 0 : index
    %c0_14 = arith.constant 0 : index
    %21 = vector.load %arg3[%c0_11, %c0_12, %c0_13, %c0_14] : memref<1x1x1x8xf32, #tpu.memory_space<vmem>>, vector<1x1x1x8xf32>
    %22 = vector.shape_cast %21 : vector<1x1x1x8xf32> to vector<1x8xf32>
    %23 = vector.shape_cast %22 : vector<1x8xf32> to vector<1x1x8xf32>
    %24 = vector.broadcast %23 : vector<1x1x8xf32> to vector<4x8x8xf32>
    %25 = arith.addf %20, %24 : vector<4x8x8xf32>
    %cst_15 = arith.constant dense<0xFF800000> : vector<4x8xf32>
    %26 = vector.multi_reduction <maximumf>, %25, %cst_15 [2] : vector<4x8x8xf32> to vector<4x8xf32>
    %27 = vector.shape_cast %26 : vector<4x8xf32> to vector<4x8x1xf32>
    %28 = vector.broadcast %27 : vector<4x8x1xf32> to vector<4x8x8xf32>
    %29 = arith.subf %25, %28 : vector<4x8x8xf32>
    %30 = math.exp %29 : vector<4x8x8xf32>
    %cst_16 = arith.constant dense<0.000000e+00> : vector<4x8xf32>
    %31 = vector.multi_reduction <add>, %30, %cst_16 [2] : vector<4x8x8xf32> to vector<4x8xf32>
    %32 = vector.shape_cast %31 : vector<4x8xf32> to vector<4x8x1xf32>
    %33 = tpu.reciprocal %32 {approx = true} : vector<4x8x1xf32> -> vector<4x8x1xf32>
    %34 = vector.broadcast %33 : vector<4x8x1xf32> to vector<4x8x8xf32>
    %35 = arith.mulf %30, %34 : vector<4x8x8xf32>
    %36 = arith.truncf %35 : vector<4x8x8xf32> to vector<4x8x8xbf16>
    %c0_17 = arith.constant 0 : index
    %c0_18 = arith.constant 0 : index
    %c0_19 = arith.constant 0 : index
    %37 = vector.load %arg16[%c0_17, %c0_18, %c0_19] : memref<4x8x8xbf16, #tpu.memory_space<vmem>>, vector<4x8x8xbf16>
    "tpu.trace_start"() <{level = 10 : i32, message = "hqk,hkd->hqd"}> : () -> ()
    %cst_20 = arith.constant dense<0.000000e+00> : vector<4x8x8xf32>
    %38 = tpu.matmul %36, %37, %cst_20 {dimension_numbers = #tpu.dot_dimension_numbers<[2], [1], [1], [2], [0, 0, 0, 1, 1, 2], [0], [0]>} : vector<4x8x8xbf16>, vector<4x8x8xbf16>, vector<4x8x8xf32> -> vector<4x8x8xf32>
    "tpu.trace_stop"() : () -> ()
    %39 = tpu.transpose %38, [1, 0, 2] : vector<4x8x8xf32> -> vector<8x4x8xf32>
    %40 = vector.shape_cast %39 : vector<8x4x8xf32> to vector<8x32xf32>
    %41 = arith.truncf %40 : vector<8x32xf32> to vector<8x32xbf16>
    %c0_21 = arith.constant 0 : index
    %c0_22 = arith.constant 0 : index
    %42 = vector.load %arg10[%c0_21, %c0_22] : memref<32x32xbf16, #tpu.memory_space<vmem>>, vector<32x32xbf16>
    %cst_23 = arith.constant dense<0.000000e+00> : vector<8x32xf32>
    %43 = tpu.matmul %41, %42, %cst_23 {dimension_numbers = #tpu.dot_dimension_numbers<[1], [0], [0], [1], [0, 0, 1, 1], [], []>} : vector<8x32xbf16>, vector<32x32xbf16>, vector<8x32xf32> -> vector<8x32xf32>
    %c0_24 = arith.constant 0 : index
    %c0_25 = arith.constant 0 : index
    %44 = vector.load %arg11[%c0_24, %c0_25] : memref<1x32xf32, #tpu.memory_space<vmem>>, vector<1x32xf32>
    %45 = vector.broadcast %44 : vector<1x32xf32> to vector<8x32xf32>
    %46 = arith.addf %43, %45 : vector<8x32xf32>
    %47 = arith.addf %46, %7 : vector<8x32xf32>
    %cst_26 = arith.constant dense<0.000000e+00> : vector<8xf32>
    %48 = vector.multi_reduction <add>, %47, %cst_26 [1] : vector<8x32xf32> to vector<8xf32>
    %49 = vector.shape_cast %48 : vector<8xf32> to vector<8x1xf32>
    %cst_27 = arith.constant 3.200000e+01 : f32
    %50 = vector.broadcast %cst_27 : f32 to vector<8x1xf32>
    %51 = arith.divf %49, %50 : vector<8x1xf32>
    %52 = vector.broadcast %51 : vector<8x1xf32> to vector<8x32xf32>
    %53 = arith.subf %47, %52 : vector<8x32xf32>
    %54 = arith.mulf %53, %53 : vector<8x32xf32>
    %cst_28 = arith.constant dense<0.000000e+00> : vector<8xf32>
    %55 = vector.multi_reduction <add>, %54, %cst_28 [1] : vector<8x32xf32> to vector<8xf32>
    %56 = vector.shape_cast %55 : vector<8xf32> to vector<8x1xf32>
    %cst_29 = arith.constant 3.200000e+01 : f32
    %57 = vector.broadcast %cst_29 : f32 to vector<8x1xf32>
    %58 = arith.divf %56, %57 : vector<8x1xf32>
    %59 = vector.broadcast %51 : vector<8x1xf32> to vector<8x32xf32>
    %60 = arith.subf %47, %59 : vector<8x32xf32>
    %cst_30 = arith.constant 9.99999996E-13 : f32
    %61 = vector.broadcast %cst_30 : f32 to vector<8x1xf32>
    %62 = arith.addf %58, %61 : vector<8x1xf32>
    %63 = math.rsqrt %62 : vector<8x1xf32>
    %64 = vector.broadcast %63 : vector<8x1xf32> to vector<8x32xf32>
    %65 = arith.mulf %60, %64 : vector<8x32xf32>
    %c0_31 = arith.constant 0 : index
    %c0_32 = arith.constant 0 : index
    %66 = vector.load %arg12[%c0_31, %c0_32] : memref<1x32xf32, #tpu.memory_space<vmem>>, vector<1x32xf32>
    %67 = vector.broadcast %66 : vector<1x32xf32> to vector<8x32xf32>
    %68 = arith.mulf %65, %67 : vector<8x32xf32>
    %c0_33 = arith.constant 0 : index
    %c0_34 = arith.constant 0 : index
    %69 = vector.load %arg13[%c0_33, %c0_34] : memref<1x32xf32, #tpu.memory_space<vmem>>, vector<1x32xf32>
    %70 = vector.broadcast %69 : vector<1x32xf32> to vector<8x32xf32>
    %71 = arith.addf %68, %70 : vector<8x32xf32>
    %c0_35 = arith.constant 0 : index
    %c0_36 = arith.constant 0 : index
    %c0_37 = arith.constant 0 : index
    %72 = vector.load %arg14[%c0_35, %c0_36, %c0_37] : memref<1x8x32xf32, #tpu.memory_space<vmem>>, vector<1x8x32xf32>
    %73 = vector.shape_cast %72 : vector<1x8x32xf32> to vector<8x32xf32>
    %74 = vector.shape_cast %71 : vector<8x32xf32> to vector<1x8x32xf32>
    tpu.vector_store %arg14[%c0_35, %c0_36, %c0_37], %74 {strides = array<i32>} : memref<1x8x32xf32, #tpu.memory_space<vmem>>, vector<1x8x32xf32>,
    return
  }
  func.func @transform_0(%arg0: i32, %arg1: i32) -> (i32, i32, i32) {
    %c0_i32 = arith.constant 0 : i32
    %c0_i32_0 = arith.constant 0 : i32
    %c0_i32_1 = arith.constant 0 : i32
    return %arg0, %c0_i32, %c0_i32_0 : i32, i32, i32
  }
  func.func @transform_1(%arg0: i32, %arg1: i32) -> (i32, i32, i32, i32) {
    %c0_i32 = arith.constant 0 : i32
    %c0_i32_0 = arith.constant 0 : i32
    %c0_i32_1 = arith.constant 0 : i32
    %c0_i32_2 = arith.constant 0 : i32
    return %arg0, %c0_i32, %c0_i32_0, %c0_i32_1 : i32, i32, i32, i32
  }
  func.func @transform_2(%arg0: i32, %arg1: i32) -> (i32, i32) {
    %c0_i32 = arith.constant 0 : i32
    %c0_i32_0 = arith.constant 0 : i32
    %c0_i32_1 = arith.constant 0 : i32
    return %c0_i32, %c0_i32_0 : i32, i32
  }
  func.func @transform_3(%arg0: i32, %arg1: i32) -> (i32, i32) {
    %c0_i32 = arith.constant 0 : i32
    %c0_i32_0 = arith.constant 0 : i32
    %c0_i32_1 = arith.constant 0 : i32
    return %c0_i32, %c0_i32_0 : i32, i32
  }
  func.func @transform_4(%arg0: i32, %arg1: i32) -> (i32, i32) {
    %c0_i32 = arith.constant 0 : i32
    %c0_i32_0 = arith.constant 0 : i32
    %c0_i32_1 = arith.constant 0 : i32
    return %c0_i32, %c0_i32_0 : i32, i32
  }
  func.func @transform_5(%arg0: i32, %arg1: i32) -> (i32, i32) {
    %c0_i32 = arith.constant 0 : i32
    %c0_i32_0 = arith.constant 0 : i32
    %c0_i32_1 = arith.constant 0 : i32
    return %c0_i32, %c0_i32_0 : i32, i32
  }
  func.func @transform_6(%arg0: i32, %arg1: i32) -> (i32, i32) {
    %c0_i32 = arith.constant 0 : i32
    %c0_i32_0 = arith.constant 0 : i32
    %c0_i32_1 = arith.constant 0 : i32
    return %c0_i32, %c0_i32_0 : i32, i32
  }
  func.func @transform_7(%arg0: i32, %arg1: i32) -> (i32, i32) {
    %c0_i32 = arith.constant 0 : i32
    %c0_i32_0 = arith.constant 0 : i32
    %c0_i32_1 = arith.constant 0 : i32
    return %c0_i32, %c0_i32_0 : i32, i32
  }
  func.func @transform_8(%arg0: i32, %arg1: i32) -> (i32, i32) {
    %c0_i32 = arith.constant 0 : i32
    %c0_i32_0 = arith.constant 0 : i32
    %c0_i32_1 = arith.constant 0 : i32
    return %c0_i32, %c0_i32_0 : i32, i32
  }
  func.func @transform_9(%arg0: i32, %arg1: i32) -> (i32, i32) {
    %c0_i32 = arith.constant 0 : i32
    %c0_i32_0 = arith.constant 0 : i32
    %c0_i32_1 = arith.constant 0 : i32
    return %c0_i32, %c0_i32_0 : i32, i32
  }
  func.func @transform_10(%arg0: i32, %arg1: i32) -> (i32, i32) {
    %c0_i32 = arith.constant 0 : i32
    %c0_i32_0 = arith.constant 0 : i32
    %c0_i32_1 = arith.constant 0 : i32
    return %c0_i32, %c0_i32_0 : i32, i32
  }
  func.func @transform_11(%arg0: i32, %arg1: i32) -> (i32, i32) {
    %c0_i32 = arith.constant 0 : i32
    %c0_i32_0 = arith.constant 0 : i32
    %c0_i32_1 = arith.constant 0 : i32
    return %c0_i32, %c0_i32_0 : i32, i32
  }
  func.func @transform_12(%arg0: i32, %arg1: i32) -> (i32, i32, i32) {
    %c0_i32 = arith.constant 0 : i32
    %c0_i32_0 = arith.constant 0 : i32
    return %arg0, %arg1, %c0_i32 : i32, i32, i32
  }
}

</mosaic_0001>

<bundles_post_ra>
// kernel: tpu_custom_call.1
= control target key start
LH: loop header
LB: loop body
LE: loop exit
PB: predicated region body
PF: predicated region fallthrough
CT: control target
= control target key end

     0   :  { %s3127_s0 = inlined_call_operand.hbm [shape: f32[2,8,32], index: 0, kind: input, shape index: {}]   ;;  %s3128_s1 = inlined_call_operand.hbm [shape: f32[2,1,1,8], index: 1, kind: input, shape index: {}]   ;;  %s3129_s2 = inlined_call_operand.hbm [shape: bf16[32,32], index: 2, kind: input, shape index: {}]   ;;  %s3130_s3 = inlined_call_operand.vmem [shape: f32[1,32], index: 3, kind: input, shape index: {}]   ;;  %s3131_s4 = inlined_call_operand.hbm [shape: bf16[32,32], index: 4, kind: input, shape index: {}]   ;;  %s3132_s5 = inlined_call_operand.vmem [shape: f32[1,32], index: 5, kind: input, shape index: {}]   ;;  %s3133_s6 = inlined_call_operand.hbm [shape: bf16[32,32], index: 6, kind: input, shape index: {}]   ;;  %s3134_s7 = inlined_call_operand.vmem [shape: f32[1,32], index: 7, kind: input, shape index: {}]   ;;  %s3135_s8 = inlined_call_operand.hbm [shape: bf16[32,32], index: 8, kind: input, shape index: {}]   ;;  %s3136_s9 = inlined_call_operand.vmem [shape: f32[1,32], index: 9, kind: input, shape index: {}]   ;;  %s3137_s10 = inlined_call_operand.vmem [shape: f32[1,32], index: 10, kind: input, shape index: {}]   ;;  %s3138_s11 = inlined_call_operand.vmem [shape: f32[1,32], index: 11, kind: input, shape index: {}]   ;;  %s3139_s12 = inlined_call_operand.hbm [shape: f32[2,8,32], index: 12, kind: output, shape index: {}]  }
   0x1   :  { %3147 = sst [smem:[#allocation28_spill]] %s3127_s0 }
   0x2   :  { %3148 = sst [smem:[#allocation29_spill]] %s3129_s2 }
   0x3   :  { %3149 = sst [smem:[#allocation30_spill]] %s3131_s4 }
   0x4   :  { %3150 = sst [smem:[#allocation31_spill]] %s3133_s6 }
   0x5   :  { %3151 = sst [smem:[#allocation32_spill]] %s3135_s8 }
   0x6   :  { %3152 = sst [smem:[#allocation33_spill]] %s3139_s12 }
   0x7   :  { %17 = vsyncpa [#allocation5], 0 }
   0x8   :  { %19 = vsyncpa [#allocation5 + $0x1], 0 }
   0x9   :  { %20 = vsyncpa [#allocation8], 0 }
   0xa   :  { %22 = vsyncpa [#allocation8 + $0x1], 0 }
   0xb   :  { %23 = vsyncpa [#allocation11], 0 }
   0xc   :  { %24 = vsyncpa [#allocation14], 0 }
   0xd   :  { %25 = vsyncpa [#allocation6], 0 }
   0xe   :  { %27 = vsyncpa [#allocation6 + $0x1], 0  ;;  %s2695_s21 = smov 0   ;;  %s2697_s22 = smov 0  }
   0xf   :  { %s2699_s23 = smov 0   ;;  %s2701_s24 = smov 0  }
  0x10   :  { %s2703_s25 = smov 0   ;;  %s2705_s26 = smov 0  }
  0x11 LB: > { %3153 = sst [smem:[#allocation22_spill]] %s2589_s21  ;;  %s2726_s27 = sadd.s32 4294967295, %s2609_s26   ;;  %s2609_s26 = sphi %s2705_s26, %s33_s26   ;;  %s2605_s25 = sphi %s2703_s25, %s3182_s25   ;;  %s2601_s24 = sphi %s2701_s24, %s3181_s24   ;;  %s2597_s23 = sphi %s2699_s23, %s3177_s23   ;;  %s2593_s22 = sphi %s2697_s22, %s3180_s22   ;;  %s2589_s21 = sphi %s2695_s21, %s3179_s21  }
  0x12   : > { %3154 = sst [smem:[#allocation23_spill]] %s2597_s23  ;;  %p2044_p0 = scmp.ge.s32.totalorder %s2609_s26, 1 }
  0x13   : > { %3155 = sst [smem:[#allocation24_spill]] %s2609_s26  ;;  %p66_p1 = scmp.eq.s32.totalorder %s2726_s27, 0 }
  0x14   : > { %p340_p2 = scmp.lt.s32.totalorder %s2609_s26, 3  ;;  %s2611_s29 = smov [#allocation9]  }
  0x15   : > { %s352_s30 = sshll.u32 %s2611_s29, 4  ;;  %s2612_s14 = smov [#allocation10]   ;;  %s353_s30 = int_to_ptr.vmem [resolvable:$true] %s352_s30 }
  0x16   : > { %p2731_p3 = pnand %p2044_p0, %p340_p2  ;;  %s368_s15 = sshll.u32 %s2612_s14, 4  ;;  %s369_s15 = int_to_ptr.vmem [resolvable:$true] %s368_s15 }
  0x17   : > { %s2613_s16 = smov [#allocation12]   ;;  %s2364_s18 = scalar_lea.vmem %s353_s30, 256 }
  0x18   : > { %p2229_p4 = pneg %p2731_p3  ;;  %s384_s17 = sshll.u32 %s2613_s16, 4  ;;  %s385_s17 = int_to_ptr.vmem [resolvable:$true] %s384_s17 }
  0x19   : > { %p2365_p8 = scmp.ne.s32.totalorder %s353_s30, %s2364_s18  ;;  %p2372_p11 = scmp.lt.s32.totalorder %s353_s30, %s353_s30 }
  0x1a   : > { %p2740_p6 = pnand %p2229_p4, %p66_p1  ;;  %p2373_p12 = scmp.lt.s32.totalorder %s2364_s18, %s2364_s18 }
  0x1c   : > { %p2355_p7 = pneg %p2740_p6  ;;  %p2374_p13 = por %p2373_p12, %p2372_p11 }
  0x1e   : > { %p2367_p9 = pnand %p2365_p8, %p2355_p7 }
  0x20   : > { %p2368_p10 = pneg %p2367_p9 }
  0x22   : > { %p2375_p0 = pnand %p2374_p13, %p2368_p10 }
  0x24   : > { %2378 = shalt.err (!%p2375_p0)
}
  0x25   : > { %s2614_s19 = smov 64   ;;  %s2615_s20 = smov 4  }
  0x26   : > { %s3158_s2 = sld [smem:[#allocation29_spill]]  ;;  %s2390_s16 = scalar_lea.vmem %s369_s15, 256 }
  0x27   : > { %p2391_p2 = scmp.ne.s32.totalorder %s369_s15, %s2390_s16  ;;  %p2398_p9 = scmp.lt.s32.totalorder %s369_s15, %s369_s15 }
  0x28   : > { %p2399_p10 = scmp.lt.s32.totalorder %s2390_s16, %s2390_s16 }
  0x29   : > { %p2393_p4 = pnand %p2391_p2, %p2355_p7 }
  0x2a   : > { %p2400_p11 = por %p2399_p10, %p2398_p9 }
  0x2b   : > { %p2394_p8 = pneg %p2393_p4 }
  0x2c   : > { %2232 = dma.hbm_to_vmem [thread:$0]  (!%p2740_p6), %s3158_s2, 256, %s353_s30, [#allocation8], %s2614_s19, %s2614_s19, %s2615_s20  }
  0x2d   : > { %p2401_p12 = pnand %p2400_p11, %p2394_p8 }
  0x2f   : > { %2404 = shalt.err (!%p2401_p12)
}
  0x30   : > { %s3159_s4 = sld [smem:[#allocation30_spill]]  ;;  %s2416_s30 = scalar_lea.vmem %s385_s17, 256 }
  0x31   : > { %p2417_p13 = scmp.ne.s32.totalorder %s385_s17, %s2416_s30  ;;  %p2424_p4 = scmp.lt.s32.totalorder %s385_s17, %s385_s17 }
  0x32   : > { %p2425_p8 = scmp.lt.s32.totalorder %s2416_s30, %s2416_s30 }
  0x33   : > { %p2419_p0 = pnand %p2417_p13, %p2355_p7 }
  0x34   : > { %p2426_p9 = por %p2425_p8, %p2424_p4 }
  0x35   : > { %p2420_p2 = pneg %p2419_p0 }
  0x36   : > { %2235 = dma.hbm_to_vmem [thread:$0]  (!%p2740_p6), %s3159_s4, 256, %s369_s15, [#allocation11], %s2614_s19, %s2614_s19, %s2615_s20  }
  0x37   : > { %p2427_p10 = pnand %p2426_p9, %p2420_p2 }
  0x39   : > { %2430 = shalt.err (!%p2427_p10)
}
  0x3a   : > { %s3160_s6 = sld [smem:[#allocation31_spill]]  ;;  %s2616_s15 = smov [#allocation13]  }
  0x3b   : > { %s400_s14 = sshll.u32 %s2616_s15, 4  ;;  %s401_s14 = int_to_ptr.vmem [resolvable:$true] %s400_s14 }
  0x3c   : > { %s2442_s16 = scalar_lea.vmem %s401_s14, 256  ;;  %p2450_p0 = scmp.lt.s32.totalorder %s401_s14, %s401_s14 }
  0x3d   : > { %p2443_p11 = scmp.ne.s32.totalorder %s401_s14, %s2442_s16  ;;  %p2451_p2 = scmp.lt.s32.totalorder %s2442_s16, %s2442_s16 }
  0x3f   : > { %p2445_p12 = pnand %p2443_p11, %p2355_p7  ;;  %p2452_p4 = por %p2451_p2, %p2450_p0 }
  0x40   : > { %2238 = dma.hbm_to_vmem [thread:$0]  (!%p2740_p6), %s3160_s6, 256, %s385_s17, [#allocation11], %s2614_s19, %s2614_s19, %s2615_s20  }
  0x41   : > { %p2446_p13 = pneg %p2445_p12 }
  0x43   : > { %p2453_p8 = pnand %p2452_p4, %p2446_p13 }
  0x45   : > { %2456 = shalt.err (!%p2453_p8)
}
  0x46   : > { %s3161_s8 = sld [smem:[#allocation32_spill]]  ;;  %s2043_s13 = sadd.s32 4294967294, %s2609_s26  }
  0x47   : > { %s45_s30 = sadd.s32 1, %s2605_s25  ;;  %s52_s12 = sadd.s32 1, %s2597_s23 }
  0x48   : > { %p47_p7 = scmp.ge.s32.totalorder %s45_s30, 2  ;;  %p59_p9 = scmp.ne.s32.totalorder %s2597_s23, %s2593_s22 }
  0x49   : > { %p60_p10 = scmp.eq.s32.totalorder %s2609_s26, 0  ;;  %p65_p12 = scmp.ne.s32.totalorder %s2593_s22, %s2589_s21 }
  0x4a   : > { %s3184_s30 = smov (%p47_p7, %s45_s30), 0  ;;  %p333_p4 = scmp.eq.s32.totalorder %s2043_s13, 1 }
  0x4b   : > { %3162 = sst [smem:[#allocation25_spill]] %s3184_s30  ;;  %p2798_p11 = por %p60_p10, %p59_p9 }
  0x4c   : > { %2241 = dma.hbm_to_vmem [thread:$0]  (!%p2740_p6), %s3161_s8, 256, %s401_s14, [#allocation14], %s2614_s19, %s2614_s19, %s2615_s20  }
  0x4d   : > { %s49_s19 = ssub.s32 %s2605_s25, %s3184_s30  ;;  %p327_p6 = scmp.eq.s32.totalorder %s2726_s27, 1 }
  0x4e   : > { %p50_p13 = scmp.eq.s32.totalorder %s49_s19, 0  ;;  %p2809_p0 = por %p66_p1, %p65_p12 }
  0x4f   : > { %p2813_p2 = por %p327_p6, %p59_p9  ;;  %p2820_p8 = por %p333_p4, %p65_p12 }
  0x50   : > { %s2818_s14 = scalar_select %p50_p13, %s2597_s23, %s52_s12  }
  0x51   : > { %s3167_s16 = scalar_select %p2820_p8, 1, 0 }
  0x52   : > { %3166 = sst [smem:[#allocation26_spill]] %s2818_s14  ;;  %p2257_p7 = scmp.lt.s32.totalorder %s2609_s26, 2 }
  0x53   : > { %3168 = sst [smem:[#allocation27_spill]] %s3167_s16  ;;  %s423_s17 = sand.u32 1, %s2597_s23  }
  0x54   : > { %s2051_s18 = sshll.u32 %s2605_s25, 7  ;;  %s2050_s19 = sshll.u32 %s423_s17, 3 }
  0x55   : > { %s3169_s0 = sld [smem:[#allocation28_spill]]  ;;  %s427_s8 = scalar_lea.vmem [#allocation4], %s2050_s19 }
  0x56   : > { %s434_s30 = sshll.u32 %s427_s8, 4  ;;  %p2832_p9 = pnand %p2257_p7, %p2798_p11  ;;  %s435_s30 = int_to_ptr.vmem [resolvable:$true] %s434_s30 }
  0x57   : > { %s441_s13 = sand.u32 1, %s2609_s26   ;;  %s424_s12 = scalar_lea.sflag [#allocation5], %s423_s17 }
  0x58   : > { %p2459_p10 = pneg %p2832_p9  ;;  %s2470_s14 = scalar_lea.vmem %s435_s30, 128 }
  0x59   : > { %p2471_p12 = scmp.ne.s32.totalorder %s435_s30, %s2470_s14  ;;  %s2617_s2 = smov [#allocation4]  }
  0x5a   : > { %s2475_s4 = sshll.u32 %s2617_s2, 4  ;;  %s2476_s4 = int_to_ptr.vmem [resolvable:$false] %s2475_s4 }
  0x5b   : > { %s432_s6 = scalar_lea.hbm %s3169_s0, %s2051_s18  ;;  %p2473_p6 = pnand %p2471_p12, %p2459_p10 }
  0x5c   : > { %s2477_s8 = scalar_lea.vmem %s2476_s4, 256  ;;  %p2478_p11 = scmp.lt.s32.totalorder %s435_s30, %s2476_s4 }
  0x5d   : > { %p2474_p13 = pneg %p2473_p6  ;;  %p2479_p4 = scmp.lt.s32.totalorder %s2477_s8, %s2470_s14 }
  0x5f   : > { %p2480_p7 = por %p2479_p4, %p2478_p11 }
  0x61   : > { %p2481_p5 = pnand %p2480_p7, %p2474_p13 }
  0x63   : > { %2484 = shalt.err (!%p2481_p5)
}
  0x64   : > { %2245 = dma.hbm_to_vmem [thread:$0]  (!%p2832_p9), %s432_s6, 128, %s435_s30, %s424_s12  }
  0x65   : > { %s2052_s29 = sshll.u32 %s2605_s25, 4  ;;  %s444_s23 = scalar_lea.vmem [#allocation7], %s423_s17 }
  0x66   : > { %s449_s0 = scalar_lea.hbm %s3128_s1, %s2052_s29  ;;  %s451_s26 = sshll.u32 %s444_s23, 4  ;;  %s452_s26 = int_to_ptr.vmem [resolvable:$true] %s451_s26 }
  0x67   : > { %s442_s2 = scalar_lea.sflag [#allocation8], %s441_s13  ;;  %s2498_s16 = scalar_lea.vmem %s452_s26, 16 }
  0x68   : > { %p2499_p12 = scmp.ne.s32.totalorder %s452_s26, %s2498_s16  ;;  %s2618_s14 = smov [#allocation7]  }
  0x69   : > { %s2503_s4 = sshll.u32 %s2618_s14, 4  ;;  %s2504_s4 = int_to_ptr.vmem [resolvable:$false] %s2503_s4 }
  0x6a   : > { %p2501_p6 = pnand %p2499_p12, %p2459_p10  ;;  %s2505_s8 = scalar_lea.vmem %s2504_s4, 32 }
  0x6b   : > { %p2506_p13 = scmp.lt.s32.totalorder %s452_s26, %s2504_s4  ;;  %p2507_p11 = scmp.lt.s32.totalorder %s2505_s8, %s2498_s16 }
  0x6c   : > { %p2502_p5 = pneg %p2501_p6 }
  0x6d   : > { %p2508_p4 = por %p2507_p11, %p2506_p13 }
  0x6f   : > { %p2509_p7 = pnand %p2508_p4, %p2502_p5 }
  0x71   : > { %2512 = shalt.err (!%p2509_p7)
}
  0x72   : > { %2248 = dma.hbm_to_vmem [thread:$0]  (!%p2832_p9), %s449_s0, 16, %s452_s26, %s442_s2  }
  0x73   : > { %460 = sbr.rel (%p2731_p3) target bundleno = 1863 (0x747), region = 68  ;;  %s2856_s6 = sand.u32 (!%p2731_p3), 1, %s2593_s22  }
  0x74   : > { %s2054_s23 = sshll.u32 (!%p2731_p3), %s2856_s6, 3  ;;  %s463_s30 = scalar_lea.sflag (!%p2731_p3), [#allocation5], %s2856_s6 }
  0x75   : > { %s466_s16 = scalar_lea.vmem (!%p2731_p3), [#allocation4], %s2054_s23 }
  0x78   : > { %2564 = dma.done.wait (%p2809_p0), %s463_s30, 128  }
  0x79   : > { %2566 = vsyncadd (%p2809_p0), %s463_s30, 4294967168  ;;  %s471_s0 = sand.u32 1, %s2726_s27   ;;  %s474_s26 = scalar_lea.vmem [#allocation7], %s2856_s6 }
  0x7a   : > { %s472_s21 = scalar_lea.sflag [#allocation8], %s471_s0 }
  0x7b   : > { %2568 = dma.done.wait (%p2809_p0), %s472_s21, 16  }
  0x7c   : > { %2570 = vsyncadd (%p2809_p0), %s472_s21, 4294967280 }
  0x7d   : > { %2572 = dma.done.wait (%p66_p1), [#allocation8], 256  }
  0x7e   : > { %2574 = vsyncadd (%p66_p1), [#allocation8], 4294967040 }
  0x7f   : > { %2576 = dma.done.wait (%p66_p1), [#allocation11], 512  }
  0x80   : > { %2578 = vsyncadd (%p66_p1), [#allocation11], 4294966784 }
  0x81   : > { %2580 = dma.done.wait (%p66_p1), [#allocation14], 256  }
  0x82   : > { %2582 = vsyncadd (%p66_p1), [#allocation14], 4294967040  ;;  %v2619_v0 = vmov 0.0   ;;  %vm2620_vm0 = vmmov 0   ;;  %v2327_v1 = vld [vmem:[#allocation10 + $0x8] sm:$0xff]   ;;  %v2328_v2 = vld [vmem:[#allocation10] sm:$0xff]   ;;  %v687_v24 = vlaneseq }
  0x83   : > { %2127 = vmatprep.subr.bf16.mxu0 %v2619_v0  ;;  %2131 = vmatprep.mubr.msk.bf16.mxu0 %vm2620_vm0, %v2619_v0  ;;  %v2890_v3 = vld [vmem:[%s466_s16] sm:$0xff]  ;;  %vm565_vm1 = vcmask 261120   ;;  %v2330_v6 = vld [vmem:[#allocation9] sm:$0xff]   ;;  %s2621_s20 = smov 104   ;;  %s2622_s17 = smov 120   ;;  %vm822_vm2 = vcmask 60416  }
  0x84   : > { %2135 = vmatprep.subr.bf16.mxu1 %v2619_v0  ;;  %2139 = vmatprep.mubr.msk.bf16.mxu1 %vm2620_vm0, %v2619_v0  ;;  %v2329_v4 = vld [vmem:[#allocation9 + $0x8] sm:$0xff]   ;;  %v541_v5 = vpack.c.bf16 %v2890_v3, %v2890_v3  ;;  %s2623_s29 = smov 112   ;;  %v2332_v20 = vld [vmem:[#allocation12] sm:$0xff]   ;;  %v2624_v22 = vmov 1983009808   ;;  %v688_v28 = vshrl.u32 %v687_v24, 7 }
  0x85   : > { %2128 = vmatpush3.bf16.msra.mxu0 %v2327_v1  ;;  %v2060_v7 = vld [vmem:[%s3132_s5] ss:$0 sm:$0xff]  ;;  %v685_v23 = vunpack.c.l.s4 %v2624_v22  ;;  %v2625_v25 = vmov 1934713408   ;;  %vm1214_vm3 = vcmask 64512   ;;  %vm1454_vm4 = vcmask 1043456  }
  0x86   : > { %2129 = vmatprep.subr.bf16.mxu0 %v2619_v0  ;;  %v2072_v13 = vld [vmem:[%s3130_s3] ss:$0 sm:$0xff]  ;;  %v717_v26 = vunpack.c.l.s4 %v2625_v25  ;;  %s2626_s2 = smov 16   ;;  %s2627_s14 = smov 8   ;;  %vm1785_vm5 = vcmask 130048   ;;  %vm1787_vm6 = vcmask 195584  }
  0x87   : > { %v2331_v15 = vld [vmem:[#allocation12 + $0x8] sm:$0xff]   ;;  %v686_v27 = vunpack.c.0.s8 %v685_v23  ;;  %s2628_s4 = smov 24   ;;  %s2096_s27 = sshll.u32 %s2601_s24, 7 }
  0x88   : > { %2136 = vmatpush3.bf16.msra.mxu1 %v2331_v15  ;;  %v718_v31 = vunpack.c.0.s8 %v717_v26  ;;  %s534_s28 = scalar_lea.vmem [#allocation15], %s2054_s23  ;;  %s3171_s12 = sld [smem:[#allocation33_spill]] }
  0x89   : > { %2130 = vmatpush3.bf16.msra.mxu0 %v2328_v2  ;;  %2137 = vmatprep.subr.bf16.mxu1 %v2619_v0  ;;  %v2926_v32 = vsub.s32 %v686_v27, %v688_v28  ;;  %s1889_s18 = scalar_lea.sflag [#allocation6], %s2856_s6 }
  0x8a   : > { %2143 = vmatprep.subr.bf16.mxu0 %v2619_v0  ;;  %v2928_v38 = vsub.s32 %v718_v31, %v688_v28 }
  0x8c   : > { %2132 = vmatmul.mubr.msk.bf16.vlgmr.msra.gmra.mxu0 %vm565_vm1, %v541_v5  ;;  %2138 = vmatpush3.bf16.msra.mxu1 %v2332_v20 }
  0x8d   : > { %2144 = vmatpush3.bf16.msra.mxu0 %v2329_v4  ;;  %2147 = vmatprep.mubr.msk.bf16.mxu0 %vm2620_vm0, %v2619_v0 }
  0x8e   : > { %2145 = vmatprep.subr.bf16.mxu0 %v2619_v0  ;;  %2151 = vmatprep.subr.bf16.mxu1 %v2619_v0 }
  0x8f   : > { %2140 = vmatmul.mubr.msk.bf16.vlgmr.msra.gmra.mxu1 %vm565_vm1, %v541_v5 }
  0x90   : > { %2153 = vmatprep.mubr.msk.bf16.mxu1 %vm2620_vm0, %v2619_v0 }
  0x91   : > { %2146 = vmatpush3.bf16.msra.mxu0 %v2330_v6 }
  0x92   : > { %2157 = vmatprep.subr.bf16.mxu0 %v2619_v0 }
  0x94   : > { %2148 = vmatmul.mubr.msk.bf16.vlgmr.msra.gmra.mxu0 %vm565_vm1, %v541_v5 }
  0x95   : > { %2159 = vmatprep.mubr.msk.bf16.mxu0 %vm2620_vm0, %v2619_v0 }
 0x14c   : > { %v603_v8 = vpop.f32.mrf.mxu0 }
 0x14d   : > { %v604_v9 = vadd.f32 %v2060_v7, %v603_v8 }
 0x14e   : > { %v2133_v10 = vpop.f32.mrf.mxu0 }
 0x14f   : > { %679 = vrot.lane.b32.xlu1 %v604_v9, %s2621_s20  ;;  %673 = vrot.lane.b32.xlu0 %v604_v9, %s2622_s17 }
 0x150   : > { %v606_v11 = vpop.f32.mrf.mxu0 }
 0x152   : > { %v2134_v12 = vpop.f32.mrf.mxu0 }
 0x153   : > { %676 = vrot.lane.b32.xlu0 %v604_v9, %s2623_s29 }
 0x154   : > { %v1046_v14 = vpop.f32.mrf.mxu0 }
 0x155   : > { %v1047_v16 = vadd.f32 %v2072_v13, %v1046_v14 }
 0x156   : > { %v2149_v17 = vpop.f32.mrf.mxu0 }
 0x157   : > { %v2913_v18 = vmul.f32 0.35355338, %v1047_v16 }
 0x158   : > { %v1049_v19 = vpop.f32.mrf.mxu0 }
 0x159   : > { %1057 = vrot.lane.b32.xlu0 %v2913_v18, %s2623_s29  ;;  %1054 = vrot.lane.b32.xlu1 %v2913_v18, %s2622_s17 }
 0x15a   : > { %v2150_v21 = vpop.f32.mrf.mxu0 }
 0x15d   : > { %1060 = vrot.lane.b32.xlu1 %v2913_v18, %s2621_s20 }
 0x1c1   : > { %v680_v29 = vpop.permute.xlu1 %679  ;;  %v674_v30 = vpop.permute.xlu0 %673 }
 0x1c2   : > { %v698_v33 = vcombine.low %v674_v30, %v680_v29  ;;  %v699_v34 = vcombine.high %v674_v30, %v680_v29 }
 0x1c4   : > { %v706_v39 = vrot.slane %v698_v33, %v2926_v32  ;;  %v713_v40 = vrot.slane %v699_v34, %v2926_v32 }
 0x1c5   : > { %v677_v35 = vpop.permute.xlu0 %676 }
 0x1c6   : > { %v682_v36 = vcombine.low %v604_v9, %v677_v35  ;;  %v683_v37 = vcombine.high %v604_v9, %v677_v35 }
 0x1c8   : > { %v690_v41 = vrot.slane %v682_v36, %v2926_v32  ;;  %v697_v42 = vrot.slane %v683_v37, %v2926_v32 }
 0x1ca   : > { %v714_v43 = vcombine.low %v690_v41, %v706_v39  ;;  %v715_v44 = vcombine.high %v690_v41, %v706_v39  ;;  %v730_v45 = vcombine.low %v697_v42, %v713_v40  ;;  %v731_v46 = vcombine.high %v697_v42, %v713_v40 }
 0x1cb   : > { %v1055_v47 = vpop.permute.xlu1 %1054  ;;  %v1058_v52 = vpop.permute.xlu0 %1057 }
 0x1cc   : > { %v722_v48 = vrot.slane %v714_v43, %v2928_v38  ;;  %v729_v49 = vrot.slane %v715_v44, %v2928_v38  ;;  %v738_v50 = vrot.slane %v730_v45, %v2928_v38  ;;  %v745_v51 = vrot.slane %v731_v46, %v2928_v38 }
 0x1cd   : > { %v1063_v57 = vcombine.low %v2913_v18, %v1058_v52  ;;  %v1064_v58 = vcombine.high %v2913_v18, %v1058_v52 }
 0x1ce   : > { %v750_v53 = vcombine.low %v722_v48, %v729_v49  ;;  %v2068_v54 = vcombine.high %v722_v48, %v729_v49  ;;  %v766_v55 = vcombine.low %v738_v50, %v745_v51  ;;  %v2069_v56 = vcombine.high %v738_v50, %v745_v51 }
 0x1cf   : > { %v1061_v59 = vpop.permute.xlu1 %1060  ;;  %v1071_v8 = vrot.slane %v1063_v57, %v2926_v32  ;;  %v1078_v9 = vrot.slane %v1064_v58, %v2926_v32 }
 0x1d0   : > { %v757_v60 = vrot.slane %v750_v53, %v2926_v32  ;;  %v765_v61 = vrot.slane %v2068_v54, %v2926_v32  ;;  %v773_v62 = vrot.slane %v766_v55, %v2926_v32  ;;  %v781_v63 = vrot.slane %v2069_v56, %v2926_v32 }
 0x1d1   : > { %v1079_v1 = vcombine.low %v1055_v47, %v1061_v59  ;;  %v1080_v2 = vcombine.high %v1055_v47, %v1061_v59 }
 0x1d2   : > { %v782_v4 = vcombine.low %v757_v60, %v765_v61  ;;  %v783_v5 = vcombine.high %v757_v60, %v765_v61  ;;  %v798_v6 = vcombine.low %v773_v62, %v781_v63  ;;  %v799_v7 = vcombine.high %v773_v62, %v781_v63 }
 0x1d3   : > { %v1087_v10 = vrot.slane %v1079_v1, %v2926_v32  ;;  %v1094_v11 = vrot.slane %v1080_v2, %v2926_v32 }
 0x1d4   : > { %v790_v12 = vrot.slane %v782_v4, %v2928_v38  ;;  %v797_v13 = vrot.slane %v783_v5, %v2928_v38  ;;  %v806_v14 = vrot.slane %v798_v6, %v2928_v38  ;;  %v813_v15 = vrot.slane %v799_v7, %v2928_v38  ;;  %v666_v4 = vpop.f32.mrf.mxu1 }
 0x1d5   : > { %v1095_v16 = vcombine.low %v1071_v8, %v1087_v10  ;;  %v1096_v17 = vcombine.high %v1071_v8, %v1087_v10  ;;  %v1111_v18 = vcombine.low %v1078_v9, %v1094_v11  ;;  %v1112_v19 = vcombine.high %v1078_v9, %v1094_v11  ;;  %v2078_v8 = vld [vmem:[%s474_s26] ss:$0 sm:$0xff] }
 0x1d6   : > { %v814_v20 = vcombine.low %v790_v12, %v806_v14  ;;  %v815_v21 = vcombine.high %v790_v12, %v806_v14  ;;  %v816_v22 = vcombine.low %v797_v13, %v813_v15  ;;  %v817_v23 = vcombine.high %v797_v13, %v813_v15  ;;  %v2141_v5 = vpop.f32.mrf.mxu1 }
 0x1d7   : > { %v1103_v24 = vrot.slane %v1095_v16, %v2928_v38  ;;  %v1110_v25 = vrot.slane %v1096_v17, %v2928_v38  ;;  %v1119_v26 = vrot.slane %v1111_v18, %v2928_v38  ;;  %v1126_v27 = vrot.slane %v1112_v19, %v2928_v38 }
 0x1d8   : > { %v818_v28 = vpack.c.bf16 %v814_v20, %v814_v20  ;;  %v819_v29 = vpack.c.bf16 %v815_v21, %v815_v21  ;;  %v820_v30 = vpack.c.bf16 %v816_v22, %v816_v22  ;;  %v821_v31 = vpack.c.bf16 %v817_v23, %v817_v23  ;;  %v669_v6 = vpop.f32.mrf.mxu1 }
 0x1d9   : > { %v1131_v33 = vcombine.low %v1103_v24, %v1110_v25  ;;  %v2076_v34 = vcombine.high %v1103_v24, %v1110_v25  ;;  %v1147_v35 = vcombine.low %v1119_v26, %v1126_v27  ;;  %v2077_v36 = vcombine.high %v1119_v26, %v1126_v27 }
 0x1da   : > { %823 = vst.msk [vmem:[#allocation2] sm:$0xf] %vm822_vm2, %v818_v28  ;;  %824 = vst.msk [vmem:[#allocation2 + $0x4] sm:$0xf] %vm822_vm2, %v819_v29  ;;  %v2142_v7 = vpop.f32.mrf.mxu1 }
 0x1db   : > { %825 = vst.msk [vmem:[#allocation2 + $0x8] sm:$0xf] %vm822_vm2, %v820_v30  ;;  %826 = vst.msk [vmem:[#allocation2 + $0xc] sm:$0xf] %vm822_vm2, %v821_v31  ;;  %v1138_v37 = vrot.slane %v1131_v33, %v2926_v32  ;;  %v1146_v39 = vrot.slane %v2076_v34, %v2926_v32  ;;  %v1154_v40 = vrot.slane %v1147_v35, %v2926_v32  ;;  %v2064_v34 = vld [vmem:[%s3134_s7] ss:$0 sm:$0xff] }
 0x1dc   : > { %v1162_v41 = vrot.slane %v2077_v36, %v2926_v32  ;;  %v667_v35 = vadd.f32 %v2064_v34, %v666_v4 }
 0x1dd   : > { %v1163_v42 = vcombine.low %v1138_v37, %v1146_v39  ;;  %v1164_v50 = vcombine.high %v1138_v37, %v1146_v39 }
 0x1de   : > { %v1179_v43 = vcombine.low %v1154_v40, %v1162_v41  ;;  %v1180_v51 = vcombine.high %v1154_v40, %v1162_v41 }
 0x1df   : > { %v1171_v44 = vrot.slane %v1163_v42, %v2928_v38  ;;  %v1178_v58 = vrot.slane %v1164_v50, %v2928_v38 }
 0x1e0   : > { %v1187_v45 = vrot.slane %v1179_v43, %v2928_v38  ;;  %v1194_v59 = vrot.slane %v1180_v51, %v2928_v38 }
 0x1e1   : > { %v1203_v46 = vld [vmem:[#allocation2] sm:$0xf]  ;;  %v1204_v47 = vld [vmem:[#allocation2 + $0x4] sm:$0xf] }
 0x1e2   : > { %v1219_v48 = vsel %vm1214_vm3, %v1203_v46, 0  ;;  %v1265_v49 = vsel %vm1214_vm3, %v1204_v47, 0  ;;  %v1195_v52 = vcombine.low %v1171_v44, %v1187_v45  ;;  %v1196_v53 = vcombine.high %v1171_v44, %v1187_v45  ;;  %v1205_v54 = vld [vmem:[#allocation2 + $0x8] sm:$0xf]  ;;  %v1206_v55 = vld [vmem:[#allocation2 + $0xc] sm:$0xf] }
 0x1e3   : > { %2152 = vmatpush3.bf16.xpose.msra.mxu1 %v1219_v48  ;;  %2158 = vmatpush3.bf16.xpose.msra.mxu0 %v1265_v49  ;;  %v1311_v60 = vsel %vm1214_vm3, %v1205_v54, 0  ;;  %v1357_v61 = vsel %vm1214_vm3, %v1206_v55, 0  ;;  %v1197_v62 = vcombine.low %v1178_v58, %v1194_v59  ;;  %v1198_v63 = vcombine.high %v1178_v58, %v1194_v59 }
 0x1e4   : > { %2163 = vmatprep.subr.bf16.mxu1 %v2619_v0  ;;  %2169 = vmatprep.subr.bf16.mxu0 %v2619_v0  ;;  %v1199_v56 = vpack.c.bf16 %v1195_v52, %v1195_v52  ;;  %v1200_v57 = vpack.c.bf16 %v1196_v53, %v1196_v53 }
 0x1e5   : > { %v1201_v1 = vpack.c.bf16 %v1197_v62, %v1197_v62  ;;  %v1202_v2 = vpack.c.bf16 %v1198_v63, %v1198_v63 }
 0x1ea   : > { %2154 = vmatmul.mubr.msk.bf16.vlgmr.msra.gmra.mxu1 %vm1214_vm3, %v1199_v56  ;;  %2160 = vmatmul.mubr.msk.bf16.vlgmr.msra.gmra.mxu0 %vm1214_vm3, %v1200_v57 }
 0x1eb   : > { %2164 = vmatpush3.bf16.xpose.msra.mxu1 %v1311_v60  ;;  %2170 = vmatpush3.bf16.xpose.msra.mxu0 %v1357_v61 }
 0x1ec   : > { %2165 = vmatprep.mubr.msk.bf16.mxu1 %vm2620_vm0, %v2619_v0  ;;  %2171 = vmatprep.mubr.msk.bf16.mxu0 %vm2620_vm0, %v2619_v0 }
 0x1ed   : > { %2175 = vmatprep.subr.bf16.mxu1 %v2619_v0  ;;  %2181 = vmatprep.subr.bf16.mxu0 %v2619_v0 }
 0x1f2   : > { %2166 = vmatmul.mubr.msk.bf16.vlgmr.msra.gmra.mxu1 %vm1214_vm3, %v1201_v1  ;;  %2172 = vmatmul.mubr.msk.bf16.vlgmr.msra.gmra.mxu0 %vm1214_vm3, %v1202_v2 }
 0x1f3   : > { %2177 = vmatprep.mubr.msk.bf16.mxu1 %vm2620_vm0, %v2619_v0  ;;  %2183 = vmatprep.mubr.msk.bf16.mxu0 %vm2620_vm0, %v2619_v0 }
 0x2aa   : > { %v1255_v9 = vpop.f32.mrf.mxu1  ;;  %v1301_v10 = vpop.f32.mrf.mxu0 }
 0x2ab   : > { %v1256_v11 = vadd.f32 %v2078_v8, %v1255_v9  ;;  %v1302_v12 = vadd.f32 %v2078_v8, %v1301_v10 }
 0x2ac   : > { %v2155_v13 = vpop.f32.mrf.mxu1  ;;  %v2161_v14 = vpop.f32.mrf.mxu0 }
 0x2ad   : > { %v1399_v15 = vsel %vm1214_vm3, %v1256_v11, -inf  ;;  %v1402_v16 = vsel %vm1214_vm3, %v1302_v12, -inf }
 0x2ae   : > { %1400 = vmax.xlane.f32.xlu0 %v1399_v15  ;;  %v1258_v17 = vpop.f32.mrf.mxu1  ;;  %1403 = vmax.xlane.f32.xlu1 %v1402_v16  ;;  %v1304_v18 = vpop.f32.mrf.mxu0 }
 0x2b0   : > { %v2156_v19 = vpop.f32.mrf.mxu1  ;;  %v2162_v20 = vpop.f32.mrf.mxu0 }
 0x2b2   : > { %v1347_v21 = vpop.f32.mrf.mxu1  ;;  %v1393_v22 = vpop.f32.mrf.mxu0 }
 0x2b3   : > { %v1348_v23 = vadd.f32 %v2078_v8, %v1347_v21  ;;  %v1394_v26 = vadd.f32 %v2078_v8, %v1393_v22 }
 0x2b4   : > { %v2167_v24 = vpop.f32.mrf.mxu1  ;;  %v2173_v25 = vpop.f32.mrf.mxu0 }
 0x2b5   : > { %v1405_v27 = vsel %vm1214_vm3, %v1348_v23, -inf  ;;  %v1408_v33 = vsel %vm1214_vm3, %v1394_v26, -inf }
 0x2b6   : > { %1406 = vmax.xlane.f32.xlu0 %v1405_v27  ;;  %v1350_v28 = vpop.f32.mrf.mxu1  ;;  %v1396_v29 = vpop.f32.mrf.mxu0 }
 0x2b8   : > { %v2168_v30 = vpop.f32.mrf.mxu1  ;;  %v2174_v31 = vpop.f32.mrf.mxu0 }
 0x2ba   : > { %1409 = vmax.xlane.f32.xlu0 %v1408_v33 }
 0x2bf   : > { %828 = vrot.lane.b32.xlu1 %v667_v35, %s2622_s17 }
 0x2c3   : > { %834 = vrot.lane.b32.xlu1 %v667_v35, %s2621_s20  ;;  %s1903_s20 = sshll.u32 %s534_s28, 4  ;;  %s1904_s20 = int_to_ptr.vmem [resolvable:$true] %s1903_s20 }
 0x2c4   : > { %s2513_s19 = scalar_lea.vmem %s1904_s20, 128 }
 0x2c5   : > { %p2514_p1 = scmp.ne.s32.totalorder %s1904_s20, %s2513_s19 }
 0x2c7   : > { %p2515_p3 = pnand %p2514_p1, %p2813_p2 }
 0x2c9   : > { %p2516_p0 = pneg %p2515_p3 }
 0x2d0   : > { %831 = vrot.lane.b32.xlu0 %v667_v35, %s2623_s29  ;;  %s1901_s29 = scalar_lea.hbm %s3171_s12, %s2096_s27 }
 0x337   : > { %v1401_v36 = vpop.xlane.xlu0 %1400  ;;  %v1404_v37 = vpop.xlane.xlu1 %1403 }
 0x338   : > { %v1411_v39 = vsub.f32 %v1256_v11, %v1401_v36  ;;  %v1412_v40 = vsub.f32 %v1302_v12, %v1404_v37 }
 0x33a   : > { %v1415_v41 = vmul.f32 1.442695, %v1411_v39  ;;  %v1417_v42 = vmul.f32 1.442695, %v1412_v40 }
 0x33b   : > { %v829_v43 = vpop.permute.xlu1 %828 }
 0x33c   : > { %2335 = vpow2.f32 %v1415_v41 }
 0x33d   : > { %2337 = vpow2.f32 %v1417_v42 }
 0x33f   : > { %v1407_v44 = vpop.xlane.xlu0 %1406  ;;  %v835_v47 = vpop.permute.xlu1 %834 }
 0x340   : > { %v1413_v45 = vsub.f32 %v1348_v23, %v1407_v44  ;;  %v853_v50 = vcombine.low %v829_v43, %v835_v47  ;;  %v854_v51 = vcombine.high %v829_v43, %v835_v47 }
 0x342   : > { %v1419_v46 = vmul.f32 1.442695, %v1413_v45  ;;  %v861_v57 = vrot.slane %v853_v50, %v2926_v32  ;;  %v868_v59 = vrot.slane %v854_v51, %v2926_v32 }
 0x343   : > { %v1410_v48 = vpop.xlane.xlu0 %1409 }
 0x344   : > { %2339 = vpow2.f32 %v1419_v46  ;;  %v1414_v49 = vsub.f32 %v1394_v26, %v1410_v48 }
 0x346   : > { %v1421_v52 = vmul.f32 1.442695, %v1414_v49 }
 0x347   : > { %v832_v53 = vpop.permute.xlu0 %831 }
 0x348   : > { %2341 = vpow2.f32 %v1421_v52  ;;  %v837_v54 = vcombine.low %v667_v35, %v832_v53  ;;  %v838_v55 = vcombine.high %v667_v35, %v832_v53 }
 0x349   : > { %v3000_v56 = vpop.eup %2335 }
 0x34a   : > { %v3003_v58 = vpop.eup %2337  ;;  %v845_v60 = vrot.slane %v837_v54, %v2926_v32  ;;  %v852_v61 = vrot.slane %v838_v55, %v2926_v32  ;;  %v1423_v62 = vsel %vm1214_vm3, %v3000_v56, 0.0 }
 0x34b   : > { %1424 = vadd.xlane.f32.xlu1 %v1423_v62  ;;  %v1426_v63 = vsel %vm1214_vm3, %v3003_v58, 0.0 }
 0x34c   : > { %v869_v1 = vcombine.low %v845_v60, %v861_v57  ;;  %v870_v2 = vcombine.high %v845_v60, %v861_v57  ;;  %v885_v4 = vcombine.low %v852_v61, %v868_v59  ;;  %v886_v5 = vcombine.high %v852_v61, %v868_v59  ;;  %1427 = vadd.xlane.f32.xlu0 %v1426_v63 }
 0x34e   : > { %v877_v6 = vrot.slane %v869_v1, %v2928_v38  ;;  %v884_v7 = vrot.slane %v870_v2, %v2928_v38  ;;  %v893_v8 = vrot.slane %v885_v4, %v2928_v38  ;;  %v900_v9 = vrot.slane %v886_v5, %v2928_v38 }
 0x350   : > { %v905_v10 = vcombine.low %v877_v6, %v884_v7  ;;  %v2070_v11 = vcombine.high %v877_v6, %v884_v7  ;;  %v921_v12 = vcombine.low %v893_v8, %v900_v9  ;;  %v2071_v13 = vcombine.high %v893_v8, %v900_v9 }
 0x351   : > { %v3016_v14 = vpop.eup %2339 }
 0x352   : > { %v912_v15 = vrot.slane %v905_v10, %v2926_v32  ;;  %v920_v16 = vrot.slane %v2070_v11, %v2926_v32  ;;  %v928_v17 = vrot.slane %v921_v12, %v2926_v32  ;;  %v936_v18 = vrot.slane %v2071_v13, %v2926_v32 }
 0x353   : > { %v1429_v19 = vsel %vm1214_vm3, %v3016_v14, 0.0 }
 0x354   : > { %v937_v20 = vcombine.low %v912_v15, %v920_v16  ;;  %v938_v21 = vcombine.high %v912_v15, %v920_v16  ;;  %v953_v22 = vcombine.low %v928_v17, %v936_v18  ;;  %v954_v23 = vcombine.high %v928_v17, %v936_v18  ;;  %1430 = vadd.xlane.f32.xlu0 %v1429_v19 }
 0x355   : > { %v2342_v24 = vpop.eup %2341 }
 0x356   : > { %v945_v25 = vrot.slane %v937_v20, %v2928_v38  ;;  %v952_v26 = vrot.slane %v938_v21, %v2928_v38  ;;  %v961_v27 = vrot.slane %v953_v22, %v2928_v38  ;;  %v968_v28 = vrot.slane %v954_v23, %v2928_v38 }
 0x357   : > { %v1432_v29 = vsel %vm1214_vm3, %v2342_v24, 0.0 }
 0x358   : > { %v969_v30 = vcombine.low %v945_v25, %v961_v27  ;;  %v970_v31 = vcombine.high %v945_v25, %v961_v27  ;;  %v971_v33 = vcombine.low %v952_v26, %v968_v28  ;;  %v972_v34 = vcombine.high %v952_v26, %v968_v28  ;;  %1433 = vadd.xlane.f32.xlu1 %v1432_v29  ;;  %v2333_v29 = vld [vmem:[#allocation13 + $0x8] sm:$0xff]  }
 0x35a   : > { %v973_v35 = vpack.c.bf16 %v969_v30, %v969_v30  ;;  %v974_v36 = vpack.c.bf16 %v970_v31, %v970_v31  ;;  %v975_v37 = vpack.c.bf16 %v971_v33, %v971_v33  ;;  %v976_v39 = vpack.c.bf16 %v972_v34, %v972_v34 }
 0x35c   : > { %977 = vst.msk [vmem:[#allocation3] sm:$0xf] %vm822_vm2, %v973_v35  ;;  %978 = vst.msk [vmem:[#allocation3 + $0x4] sm:$0xf] %vm822_vm2, %v974_v36 }
 0x35d   : > { %979 = vst.msk [vmem:[#allocation3 + $0x8] sm:$0xf] %vm822_vm2, %v975_v37  ;;  %980 = vst.msk [vmem:[#allocation3 + $0xc] sm:$0xf] %vm822_vm2, %v976_v39 }
 0x363   : > { %v1447_v40 = vld [vmem:[#allocation3] sm:$0xf]  ;;  %v1448_v41 = vld [vmem:[#allocation3 + $0x4] sm:$0xf] }
 0x364   : > { %v1456_v42 = vsel %vm1454_vm4, %v1447_v40, 0  ;;  %v1502_v43 = vsel %vm1454_vm4, %v1448_v41, 0  ;;  %v1449_v52 = vld [vmem:[#allocation3 + $0x8] sm:$0xf]  ;;  %v1450_v54 = vld [vmem:[#allocation3 + $0xc] sm:$0xf] }
 0x365   : > { %2176 = vmatpush3.bf16.msra.mxu1 %v1456_v42  ;;  %2182 = vmatpush3.bf16.msra.mxu0 %v1502_v43  ;;  %v1548_v57 = vsel %vm1454_vm4, %v1449_v52, 0  ;;  %v1594_v59 = vsel %vm1454_vm4, %v1450_v54, 0  ;;  %v2334_v41 = vld [vmem:[#allocation13] sm:$0xff]  }
 0x366   : > { %2187 = vmatprep.subr.bf16.mxu1 %v2619_v0  ;;  %2193 = vmatprep.subr.bf16.mxu0 %v2619_v0 }
 0x3d4   : > { %v1425_v44 = vpop.xlane.xlu1 %1424 }
 0x3d5   : > { %2343 = vrcp.f32 %v1425_v44  ;;  %v1428_v45 = vpop.xlane.xlu0 %1427 }
 0x3d6   : > { %2345 = vrcp.f32 %v1428_v45 }
 0x3dd   : > { %v1431_v46 = vpop.xlane.xlu0 %1430 }
 0x3de   : > { %2347 = vrcp.f32 %v1431_v46 }
 0x3e1   : > { %v1434_v47 = vpop.xlane.xlu1 %1433 }
 0x3e2   : > { %v2344_v48 = vpop.eup %2343  ;;  %2349 = vrcp.f32 %v1434_v47 }
 0x3e3   : > { %v2346_v49 = vpop.eup %2345  ;;  %v1439_v50 = vmul.f32 %v2344_v48, %v3000_v56 }
 0x3e4   : > { %v1440_v51 = vmul.f32 %v2346_v49, %v3003_v58 }
 0x3e5   : > { %v1443_v53 = vpack.c.bf16 %v1439_v50, %v1439_v50 }
 0x3e6   : > { %v1444_v55 = vpack.c.bf16 %v1440_v51, %v1440_v51 }
 0x3e7   : > { %2178 = vmatmul.mubr.msk.bf16.vlgmr.msra.gmra.mxu1 %vm1214_vm3, %v1443_v53 }
 0x3e8   : > { %2184 = vmatmul.mubr.msk.bf16.vlgmr.msra.gmra.mxu0 %vm1214_vm3, %v1444_v55  ;;  %2188 = vmatpush3.bf16.msra.mxu1 %v1548_v57 }
 0x3e9   : > { %2194 = vmatpush3.bf16.msra.mxu0 %v1594_v59  ;;  %2189 = vmatprep.mubr.msk.bf16.mxu1 %vm2620_vm0, %v2619_v0 }
 0x3ea   : > { %2195 = vmatprep.mubr.msk.bf16.mxu0 %vm2620_vm0, %v2619_v0  ;;  %2199 = vmatprep.subr.bf16.mxu1 %v2619_v0 }
 0x3eb   : > { %v2348_v56 = vpop.eup %2347 }
 0x3ec   : > { %v1441_v58 = vmul.f32 %v2348_v56, %v3016_v14 }
 0x3ee   : > { %v1445_v60 = vpack.c.bf16 %v1441_v58, %v1441_v58 }
 0x3ef   : > { %v2350_v61 = vpop.eup %2349 }
 0x3f0   : > { %2190 = vmatmul.mubr.msk.bf16.vlgmr.msra.gmra.mxu1 %vm1214_vm3, %v1445_v60  ;;  %v1442_v62 = vmul.f32 %v2350_v61, %v2342_v24 }
 0x3f1   : > { %2203 = vmatprep.mubr.msk.bf16.mxu1 %vm2620_vm0, %v2619_v0  ;;  %2200 = vmatpush3.bf16.msra.mxu1 %v2333_v29 }
 0x3f2   : > { %v1446_v63 = vpack.c.bf16 %v1442_v62, %v1442_v62  ;;  %2201 = vmatprep.subr.bf16.mxu1 %v2619_v0  ;;  %v2089_v62 = vld [vmem:[%s3136_s9] ss:$0 sm:$0xff] }
 0x3f4   : > { %2196 = vmatmul.mubr.msk.bf16.vlgmr.msra.gmra.mxu0 %vm1214_vm3, %v1446_v63 }
 0x3f5   : > { %2202 = vmatpush3.bf16.msra.mxu1 %v2334_v41 }
 0x4a7   : > { %v1492_v1 = vpop.f32.mrf.mxu1 }
 0x4a8   : > { %v1538_v2 = vpop.f32.mrf.mxu0 }
 0x4a9   : > { %v2179_v4 = vpop.f32.mrf.mxu1 }
 0x4aa   : > { %v2185_v5 = vpop.f32.mrf.mxu0 }
 0x4ab   : > { %v1495_v6 = vpop.f32.mrf.mxu1 }
 0x4ac   : > { %v1541_v7 = vpop.f32.mrf.mxu0 }
 0x4ad   : > { %v2180_v8 = vpop.f32.mrf.mxu1 }
 0x4ae   : > { %v2186_v9 = vpop.f32.mrf.mxu0 }
 0x4b0   : > { %v1584_v10 = vpop.f32.mrf.mxu1 }
 0x4b1   : > { %v1636_v12 = vcombine.low %v1492_v1, %v1584_v10  ;;  %v1637_v13 = vcombine.high %v1492_v1, %v1584_v10 }
 0x4b2   : > { %v2191_v11 = vpop.f32.mrf.mxu1 }
 0x4b3   : > { %v1644_v20 = vrot.slane %v1636_v12, %v2926_v32  ;;  %v1651_v21 = vrot.slane %v1637_v13, %v2926_v32 }
 0x4b4   : > { %v1587_v14 = vpop.f32.mrf.mxu1  ;;  %v1630_v15 = vpop.f32.mrf.mxu0 }
 0x4b5   : > { %v1652_v16 = vcombine.low %v1538_v2, %v1630_v15  ;;  %v1653_v17 = vcombine.high %v1538_v2, %v1630_v15 }
 0x4b6   : > { %v2192_v18 = vpop.f32.mrf.mxu1  ;;  %v2197_v19 = vpop.f32.mrf.mxu0 }
 0x4b7   : > { %v1660_v22 = vrot.slane %v1652_v16, %v2926_v32  ;;  %v1667_v23 = vrot.slane %v1653_v17, %v2926_v32  ;;  %v2093_v16 = vld [vmem:[%s3137_s10] ss:$0 sm:$0xff] }
 0x4b8   : > { %v1633_v24 = vpop.f32.mrf.mxu0  ;;  %v2094_v18 = vld [vmem:[%s3138_s11] ss:$0 sm:$0xff] }
 0x4b9   : > { %v1668_v25 = vcombine.low %v1644_v20, %v1660_v22  ;;  %v1669_v26 = vcombine.high %v1644_v20, %v1660_v22  ;;  %v1684_v27 = vcombine.low %v1651_v21, %v1667_v23  ;;  %v1685_v28 = vcombine.high %v1651_v21, %v1667_v23 }
 0x4ba   : > { %v2198_v30 = vpop.f32.mrf.mxu0 }
 0x4bb   : > { %v1676_v31 = vrot.slane %v1668_v25, %v2928_v38  ;;  %v1683_v33 = vrot.slane %v1669_v26, %v2928_v38  ;;  %v1692_v34 = vrot.slane %v1684_v27, %v2928_v38  ;;  %v1699_v35 = vrot.slane %v1685_v28, %v2928_v38 }
 0x4bd   : > { %v1704_v36 = vcombine.low %v1676_v31, %v1683_v33  ;;  %v2087_v37 = vcombine.high %v1676_v31, %v1683_v33  ;;  %v1720_v39 = vcombine.low %v1692_v34, %v1699_v35  ;;  %v2088_v40 = vcombine.high %v1692_v34, %v1699_v35 }
 0x4bf   : > { %v1711_v42 = vrot.slane %v1704_v36, %v2926_v32  ;;  %v1719_v43 = vrot.slane %v2087_v37, %v2926_v32  ;;  %v1727_v44 = vrot.slane %v1720_v39, %v2926_v32  ;;  %v1735_v45 = vrot.slane %v2088_v40, %v2926_v32 }
 0x4c1   : > { %v1737_v46 = vcombine.high %v1711_v42, %v1719_v43  ;;  %v1753_v47 = vcombine.high %v1727_v44, %v1735_v45  ;;  %v1736_v48 = vcombine.low %v1711_v42, %v1719_v43  ;;  %v1752_v49 = vcombine.low %v1727_v44, %v1735_v45 }
 0x4c3   : > { %v1751_v0 = vrot.slane %v1737_v46, %v2928_v38  ;;  %v1767_v50 = vrot.slane %v1753_v47, %v2928_v38  ;;  %v1744_v51 = vrot.slane %v1736_v48, %v2928_v38  ;;  %v1760_v52 = vrot.slane %v1752_v49, %v2928_v38 }
 0x4c5   : > { %v1770_v53 = vcombine.low %v1751_v0, %v1767_v50  ;;  %v1769_v54 = vcombine.high %v1744_v51, %v1760_v52  ;;  %v1768_v55 = vcombine.low %v1744_v51, %v1760_v52  ;;  %v1771_v32 = vcombine.high %v1751_v0, %v1767_v50 }
 0x4c7   : > { %1777 = vrot.lane.b32.xlu1 %v1770_v53, %s2626_s2  ;;  %1773 = vrot.lane.b32.xlu0 %v1769_v54, %s2627_s14  ;;  %s2629_s2 = smov [#allocation15]  }
 0x4c8   : > { %s2517_s24 = sshll.u32 %s2629_s2, 4  ;;  %s2518_s24 = int_to_ptr.vmem [resolvable:$false] %s2517_s24 }
 0x4c9   : > { %s2519_s23 = scalar_lea.vmem %s2518_s24, 256  ;;  %p2520_p9 = scmp.lt.s32.totalorder %s1904_s20, %s2518_s24 }
 0x4ca   : > { %p2521_p10 = scmp.lt.s32.totalorder %s2519_s23, %s2513_s19 }
 0x4cb   : > { %1781 = vrot.lane.b32.xlu1 %v1771_v32, %s2628_s4 }
 0x4cc   : > { %p2522_p12 = por %p2521_p10, %p2520_p9 }
 0x4ce   : > { %p2523_p6 = pnand %p2522_p12, %p2516_p0 }
 0x539   : > { %v1778_v57 = vpop.permute.xlu1 %1777  ;;  %v1774_v59 = vpop.permute.xlu0 %1773 }
 0x53a   : > { %v1784_v56 = vsel %vm1214_vm3, %v1768_v55, %v1774_v59 }
 0x53b   : > { %v1786_v60 = vsel %vm1785_vm5, %v1784_v56, %v1778_v57 }
 0x53d   : > { %v1782_v58 = vpop.permute.xlu1 %1781 }
 0x53e   : > { %v1788_v61 = vsel %vm1787_vm6, %v1786_v60, %v1782_v58 }
 0x53f   : > { %v1789_v38 = vpack.c.bf16 %v1788_v61, %v1788_v61 }
 0x541   : > { %2204 = vmatmul.mubr.msk.bf16.vlgmr.msra.gmra.mxu1 %vm565_vm1, %v1789_v38 }
 0x601   : > { %v1850_v63 = vpop.f32.mrf.mxu1 }
 0x602   : > { %v1851_v1 = vadd.f32 %v2089_v62, %v1850_v63 }
 0x603   : > { %v2205_v2 = vpop.f32.mrf.mxu1 }
 0x604   : > { %v1856_v4 = vadd.f32 %v1851_v1, %v2890_v3 }
 0x605   : > { %v1853_v5 = vpop.f32.mrf.mxu1 }
 0x606   : > { %v1857_v6 = vsel %vm565_vm1, %v1856_v4, 0.0 }
 0x607   : > { %1858 = vadd.xlane.f32.xlu0 %v1857_v6  ;;  %v2206_v7 = vpop.f32.mrf.mxu1 }
 0x690   : > { %v1859_v8 = vpop.xlane.xlu0 %1858 }
 0x691   : > { %v1861_v9 = vmul.f32 0.03125, %v1859_v8 }
 0x693   : > { %v1862_v10 = vsub.f32 %v1856_v4, %v1861_v9 }
 0x695   : > { %v1863_v11 = vmul.f32 %v1862_v10, %v1862_v10 }
 0x697   : > { %v1864_v12 = vsel %vm565_vm1, %v1863_v11, 0.0 }
 0x698   : > { %1865 = vadd.xlane.f32.xlu1 %v1864_v12 }
 0x721   : > { %v1866_v13 = vpop.xlane.xlu1 %1865 }
 0x722   : > { %v1867_v14 = vmul.f32 0.03125, %v1866_v13 }
 0x724   : > { %v1868_v15 = vadd.f32 1e-12, %v1867_v14 }
 0x726   : > { %2351 = vrsqrt.f32 %v1868_v15 }
 0x733   : > { %v2352_v3 = vpop.eup %2351 }
 0x734   : > { %v1870_v17 = vmul.f32 %v2352_v3, %v1862_v10 }
 0x736   : > { %v1878_v19 = vmul.f32 %v2093_v16, %v1870_v17 }
 0x738   : > { %v1886_v20 = vadd.f32 %v2094_v18, %v1878_v19 }
 0x73a   : > { %1887 = vst.msk [vmem:[%s534_s28] sm:$0xff] %vm565_vm1, %v1886_v20 }
 0x73b   : > { %2526 = shalt.err (!%p2523_p6)
}
 0x73c   : > { %s2527_s14 = scalar_lea.hbm %s1901_s29, 128  ;;  %s2531_s8 = scalar_lea.hbm %s3171_s12, 256 }
 0x73d   : > { %p2528_p5 = scmp.ne.s32.totalorder %s1901_s29, %s2527_s14  ;;  %p2532_p4 = scmp.lt.s32.totalorder %s1901_s29, %s3171_s12 }
 0x73e   : > { %p2533_p7 = scmp.lt.s32.totalorder %s2531_s8, %s2527_s14 }
 0x73f   : > { %p2529_p13 = pnand %p2528_p5, %p2813_p2 }
 0x740   : > { %p2534_p1 = por %p2533_p7, %p2532_p4 }
 0x741   : > { %p2530_p11 = pneg %p2529_p13 }
 0x743   : > { %p2535_p3 = pnand %p2534_p1, %p2530_p11 }
 0x745   : > { %2538 = shalt.err (!%p2535_p3)
}
 0x746   : > { %2227 = dma.vmem_to_hbm [thread:$0]  (%p2813_p2), %s1904_s20, 128, %s1901_s29, %s1889_s18  }
 0x747 PF: > { %s3172_s0 = sld [smem:[#allocation22_spill]] }
 0x748   : > { %s3174_s26 = sld [smem:[#allocation24_spill]] }
 0x74d   : > { %s1915_s27 = sand.u32 1, %s3172_s0  }
 0x74e   : > { %p3175_p0 = scmp.ge.s32.totalorder %s3174_s26, 2  ;;  %s1916_s28 = scalar_lea.sflag [#allocation6], %s1915_s27 }
 0x750   : > { %p2250_p9 = pnand %p3175_p0, %p2820_p8 }
 0x752   : > { %p2251_p10 = pneg %p2250_p9 }
 0x754   : > { %2584 = dma.done.wait (%p2251_p10), %s1916_s28, 128  }
 0x755   : > { %2586 = vsyncadd (%p2251_p10), %s1916_s28, 4294967168  ;;  %s33_s26 = sadd.s32 1, %s3174_s26   ;;  %s3176_s17 = sld [smem:[#allocation23_spill]] }
 0x756   : > { %p30_p12 = scmp.ge.s32.totalorder %s33_s26, 4   ;;  %s3177_s23 = sld [smem:[#allocation26_spill]] }
 0x757   : > { %s3178_s15 = sld [smem:[#allocation25_spill]]  ;;  %s3179_s21 = smov %s2593_s22 }
 0x758   : > { %s3181_s24 = smov %s2605_s25 }
 0x759   :  { %32 = sbr.rel (!%p30_p12) target bundleno = 17 (0x11), region = 147 }
 0x75b   : > { %s3180_s22 = smov %s3176_s17 }
 0x75d   : > { %s3182_s25 = smov %s3178_s15 }
 0x75e   :  { %1921 = vsyncpa [#allocation5], 1 }
 0x75f   :  { %1923 = vsyncpa [#allocation5 + $0x1], 1 }
 0x760   :  { %1924 = vsyncpa [#allocation8], 1 }
 0x761   :  { %1926 = vsyncpa [#allocation8 + $0x1], 1 }
 0x762   :  { %1927 = vsyncpa [#allocation11], 1 }
 0x763   :  { %1928 = vsyncpa [#allocation14], 1 }
 0x764   :  { %1929 = vsyncpa [#allocation6], 1 }
 0x765   :  { %1931 = vsyncpa [#allocation6 + $0x1], 1 }

</bundles_post_ra>
